<compile_context>
chip_gen: v7x
topology: tpu7x:2x2x1
jax: 0.10.0
libtpu: 0.0.40
codegen_flags: <defaults>
</compile_context>

<pallas_src>
import functools

import jax
import jax.numpy as jnp
from jax import lax
from jax.experimental import pallas as pl
from jax.experimental.pallas import tpu as pltpu


_MXU_MIN_TAPS = 48     # move the tap contraction onto the MXU for long FIRs
_MXU_SEQ_CHUNK = 256   # matmul seq chunk (256-lane MXUs on v6e/v7x; fine on v5e)
_VPU_SEQ_CHUNK = 512   # VPU-path seq sub-chunk (bounds accumulator vreg pressure)
_UNROLL_MAX_TAPS = 32  # full static unroll only for short FIRs


def _round_up(n, m):
    return ((n + m - 1) // m) * m


def _vmem_limit_bytes():
    """Per-generation scoped-VMEM limit (v7x: 64 MiB physical, v5e/v6e: 128 MiB)."""
    cap = 128 * 1024 * 1024
    try:
        cap = int(pltpu.get_tpu_info().vmem_capacity_bytes)
    except Exception:
        pass
    # ~48 MiB on v7x, 96 MiB on v5e/v6e.
    return max(32 * 1024 * 1024, min(96 * 1024 * 1024, (cap * 3) // 4))


def _flip_extend(x, extension_length):
    """Mirror-pad both ends along the last axis (matches BaseFilter1D.flip_extend)."""
    if extension_length <= 0:
        return x
    first = x[:, :, :extension_length][..., ::-1]
    last = x[:, :, x.shape[-1] - extension_length:][..., ::-1]
    return jnp.concatenate([first, x, last], axis=-1)


def _choose_filter_tile(n_filt):
    """Filters per grid step (TF). TF must equal n_filt or be a multiple of 8."""
    if n_filt <= 16:
        return n_filt, n_filt               # single filter tile == full dim
    for tf in (32, 24, 16, 8):
        if n_filt % tf == 0:
            return tf, n_filt
    f_pad = _round_up(n_filt, 8)            # rare: pad with zero filters
    return 8, f_pad


def _banded_filter_matrix(kernels_f32, seq_chunk):
    """wb[p, f*chunk + t] = w[f, p - t] when 0 <= p - t < K else 0."""
    f_pad, k = kernels_f32.shape
    p = jnp.arange(seq_chunk + k - 1)[:, None]
    t = jnp.arange(seq_chunk)[None, :]
    d = p - t                                                  # (P, chunk)
    valid = (d >= 0) & (d < k)
    wb = jnp.where(valid[None, :, :],
                   kernels_f32[:, jnp.clip(d, 0, k - 1)], 0.0)  # (F, P, chunk)
    return jnp.transpose(wb, (1, 0, 2)).reshape(seq_chunk + k - 1,
                                                f_pad * seq_chunk)


# ----------------------------------------------------------------------------
# VPU kernel: per-tap scalar-broadcast FMAs, window reused across TF filters.
# ----------------------------------------------------------------------------
def _fir_vpu_kernel(x_ref, w_ref, o_ref, *, kernel_size, seq_len, tf,
                    seq_chunk, unrolled):
    # x_ref: (rows, seq_ext)      VMEM  flip-extended rows (resident across filter tiles)
    # w_ref: (F_pad*K,)           SMEM  flattened filter bank (scalar reads)
    # o_ref: (rows, tf, seq_len)  VMEM  output block for filters [j*tf, (j+1)*tf)
    j = pl.program_id(1)
    base = j * (tf * kernel_size)
    rows = o_ref.shape[0]
    n_chunks = -(-seq_len // seq_chunk)

    if unrolled:
        # Hoisted f32 cast: one pass, reused by every tap / filter / chunk.
        x32 = x_ref[...].astype(jnp.float32)

    for c in range(n_chunks):                 # static seq sub-chunks keep the
        c0 = c * seq_chunk                    # f32 accumulators vreg-resident
        cw = min(seq_chunk, seq_len - c0)
        accs = [jnp.zeros((rows, cw), jnp.float32) for _ in range(tf)]

        if unrolled:
            for k in range(kernel_size):
                win = x32[:, c0 + k:c0 + k + cw]        # one shift per tap, shared by tf filters
                for f in range(tf):
                    accs[f] = accs[f] + win * w_ref[base + f * kernel_size + k]
        else:
            def body(k, acc_t, c0=c0, cw=cw):
                win = x_ref[:, pl.ds(c0 + k, cw)].astype(jnp.float32)  # offset VMEM load
                return tuple(a + win * w_ref[base + f * kernel_size + k]
                             for f, a in enumerate(acc_t))
            accs = list(lax.fori_loop(0, kernel_size, body, tuple(accs),
                                      unroll=8))

        # One relayout per chunk -> lane/sublane-dense (tf, cw) tiles on the store.
        tile = jnp.stack(accs, axis=1)                   # (rows, tf, cw)
        o_ref[:, :, c0:c0 + cw] = tile.astype(o_ref.dtype)


# ----------------------------------------------------------------------------
# MXU kernel (long FIRs): contract the taps against a banded filter matrix.
# ----------------------------------------------------------------------------
def _fir_mxu_kernel(x_ref, wb_ref, o_ref, *, kernel_size, seq_len, tf,
                    seq_chunk):
    # x_ref:  (rows, seq_ext_pad)       VMEM
    # wb_ref: (chunk+K-1, tf*chunk)     VMEM  banded filters for this filter tile
    # o_ref:  (rows, tf, seq_len)       VMEM
    rows = o_ref.shape[0]
    p_len = seq_chunk + kernel_size - 1
    wb = wb_ref[...]
    prec = (lax.Precision.HIGHEST if wb.dtype == jnp.float32
            else lax.Precision.DEFAULT)
    n_chunks = -(-seq_len // seq_chunk)
    for c in range(n_chunks):
        c0 = c * seq_chunk
        cw = min(seq_chunk, seq_len - c0)
        xc = x_ref[:, c0:c0 + p_len]
        if xc.dtype != wb.dtype:
            xc = xc.astype(wb.dtype)
        acc = jnp.dot(xc, wb, preferred_element_type=jnp.float32,
                      precision=prec)                    # (rows, tf*chunk)
        tile = acc.reshape(rows, tf, seq_chunk)
        o_ref[:, :, c0:c0 + cw] = tile[:, :, :cw].astype(o_ref.dtype)


# ----------------------------------------------------------------------------
# pallas_call wrapper: batched 1-D cross-correlation against a filter bank.
# ----------------------------------------------------------------------------
def batch_conv_pallas(x_flat, kernels, seq_len, *, block_rows=None):
    """x_flat: (BC, seq_ext) flip-extended rows; kernels: (F, K).

    Returns (BC_pad, F_pad, seq_len): out[bc, f, t] = sum_k x_flat[bc, t+k] * w[f, k].
    """
    bc, seq_ext = x_flat.shape
    n_filt, ksize = kernels.shape
    itemsize = jnp.dtype(x_flat.dtype).itemsize
    kernels_f32 = kernels.astype(jnp.float32)

    tf, f_pad = _choose_filter_tile(n_filt)
    if f_pad != n_filt:
        kernels_f32 = jnp.pad(kernels_f32, ((0, f_pad - n_filt), (0, 0)))

    use_mxu = ksize >= _MXU_MIN_TAPS and seq_len >= 128
    unrolled = (not use_mxu) and ksize <= _UNROLL_MAX_TAPS

    if use_mxu:
        seq_chunk = _MXU_SEQ_CHUNK
        n_chunks = -(-seq_len // seq_chunk)
        p_len = seq_chunk + ksize - 1
        needed = n_chunks * seq_chunk + ksize - 1
        if needed > seq_ext:                 # right-pad so full chunks stay in-bounds
            x_flat = jnp.pad(x_flat, ((0, 0), (0, needed - seq_ext)))
            seq_ext = needed
        mxu_dtype = (jnp.bfloat16 if jnp.dtype(x_flat.dtype) == jnp.bfloat16
                     else jnp.float32)
        wb = _banded_filter_matrix(kernels_f32, seq_chunk).astype(mxu_dtype)
    else:
        seq_chunk = min(_VPU_SEQ_CHUNK, seq_len)
        p_len = 0

    # ----- generation-aware tile sizing -----
    vmem_limit = _vmem_limit_bytes()
    budget = vmem_limit // 2                 # headroom for pipeline internals
    fixed = 2 * p_len * tf * seq_chunk * 4 if use_mxu else 0
    per_row = (2 * seq_ext * itemsize        # double-buffered input block
               + 2 * tf * seq_len * itemsize  # double-buffered output block
               + tf * seq_chunk * 4)          # live f32 accumulators / MXU result
    if unrolled:
        per_row += seq_ext * 4                # hoisted f32 copy of the rows

    if block_rows is None:
        block_rows = max(8, min(((budget - fixed) // max(per_row, 1)) // 8 * 8,
                                1024))
    block_rows = max(8, (block_rows // 8) * 8)
    block_rows = min(block_rows, _round_up(bc, 8))
    # TODO(synk): for extremely long sequences the whole seq_ext row may not fit
    # VMEM even at 8 rows; a seq-axis grid dimension with a K-1 halo (overlapping
    # element-offset index_map) would remove that limit and also let the mirror
    # halo be folded in-kernel instead of materialized by _flip_extend.

    bc_pad = _round_up(bc, block_rows)
    if bc_pad != bc:
        x_flat = jnp.pad(x_flat, ((0, bc_pad - bc), (0, 0)))

    grid = (bc_pad // block_rows, f_pad // tf)
    x_spec = pl.BlockSpec((block_rows, seq_ext), lambda i, j: (i, 0))
    out_spec = pl.BlockSpec((block_rows, tf, seq_len), lambda i, j: (i, j, 0))
    out_shape = jax.ShapeDtypeStruct((bc_pad, f_pad, seq_len), x_flat.dtype)

    if use_mxu:
        kernel = functools.partial(_fir_mxu_kernel, kernel_size=ksize,
                                   seq_len=seq_len, tf=tf, seq_chunk=seq_chunk)
        in_specs = [x_spec,
                    pl.BlockSpec((p_len, tf * seq_chunk), lambda i, j: (0, j))]
        operands = (x_flat, wb)
    else:
        kernel = functools.partial(_fir_vpu_kernel, kernel_size=ksize,
                                   seq_len=seq_len, tf=tf, seq_chunk=seq_chunk,
                                   unrolled=unrolled)
        in_specs = [x_spec,
                    # tiny, scalar-indexed -> whole flattened bank in SMEM
                    pl.BlockSpec(memory_space=pltpu.MemorySpace.SMEM)]
        operands = (x_flat, kernels_f32.reshape(-1))

    # TODO(synk): sweep pipeline_mode=pl.Buffered(3) on out_spec for tiny-K /
    # bf16 configurations where compute no longer covers the output-write DMA.
    return pl.pallas_call(
        kernel,
        out_shape=out_shape,
        grid=grid,
        in_specs=in_specs,
        out_specs=out_spec,
        compiler_params=pltpu.CompilerParams(
            # BC rows shard across TensorCores (v7x); the filter axis stays
            # on-core so the input block remains VMEM-resident across it.
            dimension_semantics=("parallel", "arbitrary"),
            vmem_limit_bytes=vmem_limit,
        ),
        cost_estimate=pl.CostEstimate(
            flops=2 * bc_pad * f_pad * seq_len * ksize,
            transcendentals=0,
            bytes_accessed=(bc_pad * seq_ext + bc_pad * f_pad * seq_len)
            * itemsize + f_pad * ksize * 4,
        ),
    )(*operands)


# ----------------------------------------------------------------------------
# Jitted forward path (flip_extend + conv; output already in final layout).
# ----------------------------------------------------------------------------
@functools.partial(jax.jit, static_argnames=("block_rows",))
def _filterbank_forward(x, kernels, block_rows=None):
    batch, n_chs, seq_len = x.shape
    n_filt, ksize = kernels.shape
    x_ext = _flip_extend(x, ksize // 2)
    x_flat = x_ext.reshape(batch * n_chs, -1)
    out = batch_conv_pallas(x_flat, kernels, seq_len, block_rows=block_rows)
    # Kernel writes the final (BC, F, seq) layout -> trim (rare) padding + reshape.
    out = out[:batch * n_chs, :n_filt, :]
    return out.reshape(batch, n_chs, n_filt, seq_len)


# ----------------------------------------------------------------------------
# Module mirroring BaseFilter1D.forward semantics.
# ----------------------------------------------------------------------------
class PallasFilter1D:
    """JAX/Pallas port of mngs.nn.BaseFilter1D.

    BaseFilter1D is abstract (kernels come from a subclass' init_kernels);
    here the filter bank (n_kernels, kernel_size) is supplied at construction.
    """

    def __init__(self, kernels, fp16=False):
        self.kernels = jnp.asarray(kernels)
        self.fp16 = fp16

    @property
    def kernel_size(self):
        return self.kernels.shape[-1]

    @staticmethod
    def flip_extend(x, extension_length):
        return _flip_extend(x, extension_length)

    @staticmethod
    def remove_edges(x, edge_len):
        edge_len = x.shape[-1] // 8 if edge_len == "auto" else edge_len
        if 0 < edge_len:
            return x[..., edge_len:-edge_len]
        return x

    def __call__(self, x, t=None, edge_len=0, block_rows=None):
        if self.fp16:
            # bfloat16 is the TPU-native half precision (PyTorch uses fp16).
            x = x.astype(jnp.bfloat16)
        if x.ndim == 2:
            x = x[None]
        assert x.ndim == 3, "expected (batch, n_chs, seq_len)"
        batch, n_chs, seq_len = x.shape

        filt = _filterbank_forward(x, self.kernels, block_rows=block_rows)
        assert filt.shape == (batch, n_chs, self.kernels.shape[0], seq_len)

        filt = self.remove_edges(filt, edge_len)
        if t is None:
            return filt
        return filt, self.remove_edges(t, edge_len)


# ----------------------------------------------------------------------------
# Pure-jnp reference for verification.
# ----------------------------------------------------------------------------
def _reference(x, kernels):
    b, c, s = x.shape
    nf, ks = kernels.shape
    xe = _flip_extend(x, ks // 2).astype(jnp.float32)
    w = kernels.astype(jnp.float32)
    out = jnp.zeros((b, c, nf, s), jnp.float32)
    for k in range(ks):
        out = out + xe[:, :, None, k:k + s] * w[None, None, :, k, None]
    return out


def _check(name, y, x, kernels, tol):
    err = float(jnp.max(jnp.abs(y.astype(jnp.float32) - _reference(x, kernels))))
    assert err < tol, f"{name}: max abs err {err} >= {tol}"


if __name__ == "__main__":
    key = jax.random.PRNGKey(0)
    k1, k2, k3, k4, k5, k6, k7, k8, k9, k10 = jax.random.split(key, 10)

    # Case 1: small shapes matching the module's NCL convention (VPU, unrolled).
    x1 = jax.random.normal(k1, (2, 4, 16), dtype=jnp.float32)
    w1 = jax.random.normal(k2, (3, 9), dtype=jnp.float32)
    y1 = jax.block_until_ready(PallasFilter1D(w1)(x1))
    assert y1.shape == (2, 4, 3, 16), y1.shape
    _check("case1", y1, x1, w1, 1e-4)

    # Case 2: row padding + multi-tile BC grid (VPU, unrolled, explicit block_rows).
    x2 = jax.random.normal(k3, (3, 5, 128), dtype=jnp.float32)
    w2 = jax.random.normal(k4, (5, 17), dtype=jnp.float32)
    y2 = jax.block_until_ready(PallasFilter1D(w2)(x2, block_rows=8))
    assert y2.shape == (3, 5, 5, 128), y2.shape
    _check("case2", y2, x2, w2, 1e-4)

    # Case 3: long FIR -> MXU banded-matmul path.
    x3 = jax.random.normal(k5, (2, 3, 256), dtype=jnp.float32)
    w3 = jax.random.normal(k6, (4, 64), dtype=jnp.float32)
    y3 = jax.block_until_ready(PallasFilter1D(w3)(x3))
    assert y3.shape == (2, 3, 4, 256), y3.shape
    _check("case3", y3, x3, w3, 1e-3)

    # Case 4: MXU path with a remainder seq chunk (seq not a multiple of 256).
    x4 = jax.random.normal(k7, (1, 2, 300), dtype=jnp.float32)
    w4 = jax.random.normal(k8, (3, 64), dtype=jnp.float32)
    y4 = jax.block_until_ready(PallasFilter1D(w4)(x4))
    assert y4.shape == (1, 2, 3, 300), y4.shape
    _check("case4", y4, x4, w4, 1e-3)

    # Case 5: medium K on short seq -> VPU fori_loop(unroll=8) path.
    x5 = jax.random.normal(k9, (1, 3, 64), dtype=jnp.float32)
    w5 = jax.random.normal(k10, (6, 40), dtype=jnp.float32)
    y5 = jax.block_until_ready(PallasFilter1D(w5)(x5))
    assert y5.shape == (1, 3, 6, 64), y5.shape
    _check("case5", y5, x5, w5, 1e-4)

    # Case 6: fp16 flag (mapped to bfloat16) — loose tolerance vs f32 reference.
    y6 = jax.block_until_ready(PallasFilter1D(w1, fp16=True)(x1))
    assert y6.shape == (2, 4, 3, 16), y6.shape
    _check("case6-bf16", y6, x1, w1, 0.2)

    print("KERNEL_OK")
</pallas_src>

<mosaic_0001>
module attributes {stable_mosaic.version = 11 : i64} {
  func.func @_fir_vpu_kernel(%arg0: i32, %arg1: i32, %arg2: memref<8x24xf32, #tpu.memory_space<vmem>>, %arg3: memref<27xf32, #tpu.memory_space<smem>>, %arg4: memref<8x3x16xf32, #tpu.memory_space<vmem>>) attributes {dimension_semantics = [#tpu.dimension_semantics<parallel>, #tpu.dimension_semantics<arbitrary>], iteration_bounds = array<i64: 1, 1>, scalar_prefetch = 0 : i64, scratch_operands = 0 : i64, tpu.core_type = #tpu.core_type<tc>, window_params = [{transform_indices = @transform_0, window_bounds = array<i64: 8, 24>}, {transform_indices = @transform_1, window_bounds = array<i64: 27>}, {transform_indices = @transform_2, window_bounds = array<i64: 8, 3, 16>}]} {
    %c27_i32 = arith.constant 27 : i32
    %0 = arith.muli %arg1, %c27_i32 : i32
    %c0 = arith.constant 0 : index
    %c0_0 = arith.constant 0 : index
    %1 = vector.load %arg2[%c0, %c0_0] : memref<8x24xf32, #tpu.memory_space<vmem>>, vector<8x24xf32>
    %cst = arith.constant 0.000000e+00 : f32
    %2 = vector.broadcast %cst : f32 to vector<8x16xf32>
    %cst_1 = arith.constant 0.000000e+00 : f32
    %3 = vector.broadcast %cst_1 : f32 to vector<8x16xf32>
    %cst_2 = arith.constant 0.000000e+00 : f32
    %4 = vector.broadcast %cst_2 : f32 to vector<8x16xf32>
    %5 = vector.extract_strided_slice %1 {offsets = [0, 0], sizes = [8, 16], strides = [1, 1]} : vector<8x24xf32> to vector<8x16xf32>
    %c0_i32 = arith.constant 0 : i32
    %6 = arith.addi %0, %c0_i32 : i32
    %c0_i32_3 = arith.constant 0 : i32
    %7 = arith.addi %6, %c0_i32_3 : i32
    %8 = arith.index_cast %7 : i32 to index
    %9 = memref.load %arg3[%8] : memref<27xf32, #tpu.memory_space<smem>>
    %10 = vector.broadcast %9 : f32 to vector<8x16xf32>
    %11 = arith.mulf %5, %10 : vector<8x16xf32>
    %12 = arith.addf %2, %11 : vector<8x16xf32>
    %c9_i32 = arith.constant 9 : i32
    %13 = arith.addi %0, %c9_i32 : i32
    %c0_i32_4 = arith.constant 0 : i32
    %14 = arith.addi %13, %c0_i32_4 : i32
    %15 = arith.index_cast %14 : i32 to index
    %16 = memref.load %arg3[%15] : memref<27xf32, #tpu.memory_space<smem>>
    %17 = vector.broadcast %16 : f32 to vector<8x16xf32>
    %18 = arith.mulf %5, %17 : vector<8x16xf32>
    %19 = arith.addf %3, %18 : vector<8x16xf32>
    %c18_i32 = arith.constant 18 : i32
    %20 = arith.addi %0, %c18_i32 : i32
    %c0_i32_5 = arith.constant 0 : i32
    %21 = arith.addi %20, %c0_i32_5 : i32
    %22 = arith.index_cast %21 : i32 to index
    %23 = memref.load %arg3[%22] : memref<27xf32, #tpu.memory_space<smem>>
    %24 = vector.broadcast %23 : f32 to vector<8x16xf32>
    %25 = arith.mulf %5, %24 : vector<8x16xf32>
    %26 = arith.addf %4, %25 : vector<8x16xf32>
    %27 = vector.extract_strided_slice %1 {offsets = [0, 1], sizes = [8, 16], strides = [1, 1]} : vector<8x24xf32> to vector<8x16xf32>
    %c0_i32_6 = arith.constant 0 : i32
    %28 = arith.addi %0, %c0_i32_6 : i32
    %c1_i32 = arith.constant 1 : i32
    %29 = arith.addi %28, %c1_i32 : i32
    %30 = arith.index_cast %29 : i32 to index
    %31 = memref.load %arg3[%30] : memref<27xf32, #tpu.memory_space<smem>>
    %32 = vector.broadcast %31 : f32 to vector<8x16xf32>
    %33 = arith.mulf %27, %32 : vector<8x16xf32>
    %34 = arith.addf %12, %33 : vector<8x16xf32>
    %c9_i32_7 = arith.constant 9 : i32
    %35 = arith.addi %0, %c9_i32_7 : i32
    %c1_i32_8 = arith.constant 1 : i32
    %36 = arith.addi %35, %c1_i32_8 : i32
    %37 = arith.index_cast %36 : i32 to index
    %38 = memref.load %arg3[%37] : memref<27xf32, #tpu.memory_space<smem>>
    %39 = vector.broadcast %38 : f32 to vector<8x16xf32>
    %40 = arith.mulf %27, %39 : vector<8x16xf32>
    %41 = arith.addf %19, %40 : vector<8x16xf32>
    %c18_i32_9 = arith.constant 18 : i32
    %42 = arith.addi %0, %c18_i32_9 : i32
    %c1_i32_10 = arith.constant 1 : i32
    %43 = arith.addi %42, %c1_i32_10 : i32
    %44 = arith.index_cast %43 : i32 to index
    %45 = memref.load %arg3[%44] : memref<27xf32, #tpu.memory_space<smem>>
    %46 = vector.broadcast %45 : f32 to vector<8x16xf32>
    %47 = arith.mulf %27, %46 : vector<8x16xf32>
    %48 = arith.addf %26, %47 : vector<8x16xf32>
    %49 = vector.extract_strided_slice %1 {offsets = [0, 2], sizes = [8, 16], strides = [1, 1]} : vector<8x24xf32> to vector<8x16xf32>
    %c0_i32_11 = arith.constant 0 : i32
    %50 = arith.addi %0, %c0_i32_11 : i32
    %c2_i32 = arith.constant 2 : i32
    %51 = arith.addi %50, %c2_i32 : i32
    %52 = arith.index_cast %51 : i32 to index
    %53 = memref.load %arg3[%52] : memref<27xf32, #tpu.memory_space<smem>>
    %54 = vector.broadcast %53 : f32 to vector<8x16xf32>
    %55 = arith.mulf %49, %54 : vector<8x16xf32>
    %56 = arith.addf %34, %55 : vector<8x16xf32>
    %c9_i32_12 = arith.constant 9 : i32
    %57 = arith.addi %0, %c9_i32_12 : i32
    %c2_i32_13 = arith.constant 2 : i32
    %58 = arith.addi %57, %c2_i32_13 : i32
    %59 = arith.index_cast %58 : i32 to index
    %60 = memref.load %arg3[%59] : memref<27xf32, #tpu.memory_space<smem>>
    %61 = vector.broadcast %60 : f32 to vector<8x16xf32>
    %62 = arith.mulf %49, %61 : vector<8x16xf32>
    %63 = arith.addf %41, %62 : vector<8x16xf32>
    %c18_i32_14 = arith.constant 18 : i32
    %64 = arith.addi %0, %c18_i32_14 : i32
    %c2_i32_15 = arith.constant 2 : i32
    %65 = arith.addi %64, %c2_i32_15 : i32
    %66 = arith.index_cast %65 : i32 to index
    %67 = memref.load %arg3[%66] : memref<27xf32, #tpu.memory_space<smem>>
    %68 = vector.broadcast %67 : f32 to vector<8x16xf32>
    %69 = arith.mulf %49, %68 : vector<8x16xf32>
    %70 = arith.addf %48, %69 : vector<8x16xf32>
    %71 = vector.extract_strided_slice %1 {offsets = [0, 3], sizes = [8, 16], strides = [1, 1]} : vector<8x24xf32> to vector<8x16xf32>
    %c0_i32_16 = arith.constant 0 : i32
    %72 = arith.addi %0, %c0_i32_16 : i32
    %c3_i32 = arith.constant 3 : i32
    %73 = arith.addi %72, %c3_i32 : i32
    %74 = arith.index_cast %73 : i32 to index
    %75 = memref.load %arg3[%74] : memref<27xf32, #tpu.memory_space<smem>>
    %76 = vector.broadcast %75 : f32 to vector<8x16xf32>
    %77 = arith.mulf %71, %76 : vector<8x16xf32>
    %78 = arith.addf %56, %77 : vector<8x16xf32>
    %c9_i32_17 = arith.constant 9 : i32
    %79 = arith.addi %0, %c9_i32_17 : i32
    %c3_i32_18 = arith.constant 3 : i32
    %80 = arith.addi %79, %c3_i32_18 : i32
    %81 = arith.index_cast %80 : i32 to index
    %82 = memref.load %arg3[%81] : memref<27xf32, #tpu.memory_space<smem>>
    %83 = vector.broadcast %82 : f32 to vector<8x16xf32>
    %84 = arith.mulf %71, %83 : vector<8x16xf32>
    %85 = arith.addf %63, %84 : vector<8x16xf32>
    %c18_i32_19 = arith.constant 18 : i32
    %86 = arith.addi %0, %c18_i32_19 : i32
    %c3_i32_20 = arith.constant 3 : i32
    %87 = arith.addi %86, %c3_i32_20 : i32
    %88 = arith.index_cast %87 : i32 to index
    %89 = memref.load %arg3[%88] : memref<27xf32, #tpu.memory_space<smem>>
    %90 = vector.broadcast %89 : f32 to vector<8x16xf32>
    %91 = arith.mulf %71, %90 : vector<8x16xf32>
    %92 = arith.addf %70, %91 : vector<8x16xf32>
    %93 = vector.extract_strided_slice %1 {offsets = [0, 4], sizes = [8, 16], strides = [1, 1]} : vector<8x24xf32> to vector<8x16xf32>
    %c0_i32_21 = arith.constant 0 : i32
    %94 = arith.addi %0, %c0_i32_21 : i32
    %c4_i32 = arith.constant 4 : i32
    %95 = arith.addi %94, %c4_i32 : i32
    %96 = arith.index_cast %95 : i32 to index
    %97 = memref.load %arg3[%96] : memref<27xf32, #tpu.memory_space<smem>>
    %98 = vector.broadcast %97 : f32 to vector<8x16xf32>
    %99 = arith.mulf %93, %98 : vector<8x16xf32>
    %100 = arith.addf %78, %99 : vector<8x16xf32>
    %c9_i32_22 = arith.constant 9 : i32
    %101 = arith.addi %0, %c9_i32_22 : i32
    %c4_i32_23 = arith.constant 4 : i32
    %102 = arith.addi %101, %c4_i32_23 : i32
    %103 = arith.index_cast %102 : i32 to index
    %104 = memref.load %arg3[%103] : memref<27xf32, #tpu.memory_space<smem>>
    %105 = vector.broadcast %104 : f32 to vector<8x16xf32>
    %106 = arith.mulf %93, %105 : vector<8x16xf32>
    %107 = arith.addf %85, %106 : vector<8x16xf32>
    %c18_i32_24 = arith.constant 18 : i32
    %108 = arith.addi %0, %c18_i32_24 : i32
    %c4_i32_25 = arith.constant 4 : i32
    %109 = arith.addi %108, %c4_i32_25 : i32
    %110 = arith.index_cast %109 : i32 to index
    %111 = memref.load %arg3[%110] : memref<27xf32, #tpu.memory_space<smem>>
    %112 = vector.broadcast %111 : f32 to vector<8x16xf32>
    %113 = arith.mulf %93, %112 : vector<8x16xf32>
    %114 = arith.addf %92, %113 : vector<8x16xf32>
    %115 = vector.extract_strided_slice %1 {offsets = [0, 5], sizes = [8, 16], strides = [1, 1]} : vector<8x24xf32> to vector<8x16xf32>
    %c0_i32_26 = arith.constant 0 : i32
    %116 = arith.addi %0, %c0_i32_26 : i32
    %c5_i32 = arith.constant 5 : i32
    %117 = arith.addi %116, %c5_i32 : i32
    %118 = arith.index_cast %117 : i32 to index
    %119 = memref.load %arg3[%118] : memref<27xf32, #tpu.memory_space<smem>>
    %120 = vector.broadcast %119 : f32 to vector<8x16xf32>
    %121 = arith.mulf %115, %120 : vector<8x16xf32>
    %122 = arith.addf %100, %121 : vector<8x16xf32>
    %c9_i32_27 = arith.constant 9 : i32
    %123 = arith.addi %0, %c9_i32_27 : i32
    %c5_i32_28 = arith.constant 5 : i32
    %124 = arith.addi %123, %c5_i32_28 : i32
    %125 = arith.index_cast %124 : i32 to index
    %126 = memref.load %arg3[%125] : memref<27xf32, #tpu.memory_space<smem>>
    %127 = vector.broadcast %126 : f32 to vector<8x16xf32>
    %128 = arith.mulf %115, %127 : vector<8x16xf32>
    %129 = arith.addf %107, %128 : vector<8x16xf32>
    %c18_i32_29 = arith.constant 18 : i32
    %130 = arith.addi %0, %c18_i32_29 : i32
    %c5_i32_30 = arith.constant 5 : i32
    %131 = arith.addi %130, %c5_i32_30 : i32
    %132 = arith.index_cast %131 : i32 to index
    %133 = memref.load %arg3[%132] : memref<27xf32, #tpu.memory_space<smem>>
    %134 = vector.broadcast %133 : f32 to vector<8x16xf32>
    %135 = arith.mulf %115, %134 : vector<8x16xf32>
    %136 = arith.addf %114, %135 : vector<8x16xf32>
    %137 = vector.extract_strided_slice %1 {offsets = [0, 6], sizes = [8, 16], strides = [1, 1]} : vector<8x24xf32> to vector<8x16xf32>
    %c0_i32_31 = arith.constant 0 : i32
    %138 = arith.addi %0, %c0_i32_31 : i32
    %c6_i32 = arith.constant 6 : i32
    %139 = arith.addi %138, %c6_i32 : i32
    %140 = arith.index_cast %139 : i32 to index
    %141 = memref.load %arg3[%140] : memref<27xf32, #tpu.memory_space<smem>>
    %142 = vector.broadcast %141 : f32 to vector<8x16xf32>
    %143 = arith.mulf %137, %142 : vector<8x16xf32>
    %144 = arith.addf %122, %143 : vector<8x16xf32>
    %c9_i32_32 = arith.constant 9 : i32
    %145 = arith.addi %0, %c9_i32_32 : i32
    %c6_i32_33 = arith.constant 6 : i32
    %146 = arith.addi %145, %c6_i32_33 : i32
    %147 = arith.index_cast %146 : i32 to index
    %148 = memref.load %arg3[%147] : memref<27xf32, #tpu.memory_space<smem>>
    %149 = vector.broadcast %148 : f32 to vector<8x16xf32>
    %150 = arith.mulf %137, %149 : vector<8x16xf32>
    %151 = arith.addf %129, %150 : vector<8x16xf32>
    %c18_i32_34 = arith.constant 18 : i32
    %152 = arith.addi %0, %c18_i32_34 : i32
    %c6_i32_35 = arith.constant 6 : i32
    %153 = arith.addi %152, %c6_i32_35 : i32
    %154 = arith.index_cast %153 : i32 to index
    %155 = memref.load %arg3[%154] : memref<27xf32, #tpu.memory_space<smem>>
    %156 = vector.broadcast %155 : f32 to vector<8x16xf32>
    %157 = arith.mulf %137, %156 : vector<8x16xf32>
    %158 = arith.addf %136, %157 : vector<8x16xf32>
    %159 = vector.extract_strided_slice %1 {offsets = [0, 7], sizes = [8, 16], strides = [1, 1]} : vector<8x24xf32> to vector<8x16xf32>
    %c0_i32_36 = arith.constant 0 : i32
    %160 = arith.addi %0, %c0_i32_36 : i32
    %c7_i32 = arith.constant 7 : i32
    %161 = arith.addi %160, %c7_i32 : i32
    %162 = arith.index_cast %161 : i32 to index
    %163 = memref.load %arg3[%162] : memref<27xf32, #tpu.memory_space<smem>>
    %164 = vector.broadcast %163 : f32 to vector<8x16xf32>
    %165 = arith.mulf %159, %164 : vector<8x16xf32>
    %166 = arith.addf %144, %165 : vector<8x16xf32>
    %c9_i32_37 = arith.constant 9 : i32
    %167 = arith.addi %0, %c9_i32_37 : i32
    %c7_i32_38 = arith.constant 7 : i32
    %168 = arith.addi %167, %c7_i32_38 : i32
    %169 = arith.index_cast %168 : i32 to index
    %170 = memref.load %arg3[%169] : memref<27xf32, #tpu.memory_space<smem>>
    %171 = vector.broadcast %170 : f32 to vector<8x16xf32>
    %172 = arith.mulf %159, %171 : vector<8x16xf32>
    %173 = arith.addf %151, %172 : vector<8x16xf32>
    %c18_i32_39 = arith.constant 18 : i32
    %174 = arith.addi %0, %c18_i32_39 : i32
    %c7_i32_40 = arith.constant 7 : i32
    %175 = arith.addi %174, %c7_i32_40 : i32
    %176 = arith.index_cast %175 : i32 to index
    %177 = memref.load %arg3[%176] : memref<27xf32, #tpu.memory_space<smem>>
    %178 = vector.broadcast %177 : f32 to vector<8x16xf32>
    %179 = arith.mulf %159, %178 : vector<8x16xf32>
    %180 = arith.addf %158, %179 : vector<8x16xf32>
    %181 = vector.extract_strided_slice %1 {offsets = [0, 8], sizes = [8, 16], strides = [1, 1]} : vector<8x24xf32> to vector<8x16xf32>
    %c0_i32_41 = arith.constant 0 : i32
    %182 = arith.addi %0, %c0_i32_41 : i32
    %c8_i32 = arith.constant 8 : i32
    %183 = arith.addi %182, %c8_i32 : i32
    %184 = arith.index_cast %183 : i32 to index
    %185 = memref.load %arg3[%184] : memref<27xf32, #tpu.memory_space<smem>>
    %186 = vector.broadcast %185 : f32 to vector<8x16xf32>
    %187 = arith.mulf %181, %186 : vector<8x16xf32>
    %188 = arith.addf %166, %187 : vector<8x16xf32>
    %c9_i32_42 = arith.constant 9 : i32
    %189 = arith.addi %0, %c9_i32_42 : i32
    %c8_i32_43 = arith.constant 8 : i32
    %190 = arith.addi %189, %c8_i32_43 : i32
    %191 = arith.index_cast %190 : i32 to index
    %192 = memref.load %arg3[%191] : memref<27xf32, #tpu.memory_space<smem>>
    %193 = vector.broadcast %192 : f32 to vector<8x16xf32>
    %194 = arith.mulf %181, %193 : vector<8x16xf32>
    %195 = arith.addf %173, %194 : vector<8x16xf32>
    %c18_i32_44 = arith.constant 18 : i32
    %196 = arith.addi %0, %c18_i32_44 : i32
    %c8_i32_45 = arith.constant 8 : i32
    %197 = arith.addi %196, %c8_i32_45 : i32
    %198 = arith.index_cast %197 : i32 to index
    %199 = memref.load %arg3[%198] : memref<27xf32, #tpu.memory_space<smem>>
    %200 = vector.broadcast %199 : f32 to vector<8x16xf32>
    %201 = arith.mulf %181, %200 : vector<8x16xf32>
    %202 = arith.addf %180, %201 : vector<8x16xf32>
    %203 = vector.shape_cast %188 : vector<8x16xf32> to vector<8x1x16xf32>
    %204 = vector.shape_cast %195 : vector<8x16xf32> to vector<8x1x16xf32>
    %205 = vector.shape_cast %202 : vector<8x16xf32> to vector<8x1x16xf32>
    %206 = tpu.concatenate %203, %204, %205 in 1 : vector<8x1x16xf32>, vector<8x1x16xf32>, vector<8x1x16xf32> -> vector<8x3x16xf32>
    %c0_46 = arith.constant 0 : index
    %c0_47 = arith.constant 0 : index
    %c0_48 = arith.constant 0 : index
    %207 = vector.load %arg4[%c0_46, %c0_47, %c0_48] : memref<8x3x16xf32, #tpu.memory_space<vmem>>, vector<8x3x16xf32>
    tpu.vector_store %arg4[%c0_46, %c0_47, %c0_48], %206 {strides = array<i32>} : memref<8x3x16xf32, #tpu.memory_space<vmem>>, vector<8x3x16xf32>,
    return
  }
  func.func @transform_0(%arg0: i32, %arg1: i32) -> (i32, i32) {
    %c0_i32 = arith.constant 0 : i32
    %c0_i32_0 = arith.constant 0 : i32
    return %arg0, %c0_i32 : i32, i32
  }
  func.func @transform_1(%arg0: i32, %arg1: i32) -> i32 {
    %c0_i32 = arith.constant 0 : i32
    %c0_i32_0 = arith.constant 0 : i32
    return %c0_i32 : i32
  }
  func.func @transform_2(%arg0: i32, %arg1: i32) -> (i32, i32, i32) {
    %c0_i32 = arith.constant 0 : i32
    %c0_i32_0 = arith.constant 0 : i32
    return %arg0, %arg1, %c0_i32 : i32, i32, i32
  }
}

</mosaic_0001>

<bundles_post_ra>
// kernel: _filterbank_forward.1
= control target key start
LH: loop header
LB: loop body
LE: loop exit
PB: predicated region body
PF: predicated region fallthrough
CT: control target
= control target key end

     0   :  { %7 = vsyncpa [#allocation3], 0  ;;  %s806_s0 = inlined_call_operand.hbm [shape: f32[8,24], index: 0, kind: input, shape index: {}]   ;;  %s807_s1 = inlined_call_operand.hbm [shape: f32[27], index: 1, kind: input, shape index: {}]   ;;  %s808_s2 = inlined_call_operand.hbm [shape: f32[8,3,16], index: 2, kind: output, shape index: {}]  }
   0x1   :  { %8 = vsyncpa [#allocation5], 0 }
   0x2   :  { %9 = vsyncpa [#allocation4], 0  ;;  %s650_s9 = smov [#allocation2]   ;;  %s590_s13 = scalar_lea.hbm %s806_s0, 128 }
   0x3   :  { %s16_s10 = sshll.u32 %s650_s9, 4  ;;  %p591_p0 = scmp.ne.s32.totalorder %s806_s0, %s590_s13  ;;  %s17_s10 = int_to_ptr.vmem [resolvable:$true] %s16_s10 }
   0x4   :  { %p594_p1 = scmp.lt.u32.totalorder %s590_s13, %s806_s0 }
   0x6   :  { %p596_p2 = pnand %p594_p1, %p591_p0 }
   0x8   :  { %599 = shalt.err (!%p596_p2)
}
   0x9   :  { %s600_s18 = scalar_lea.vmem %s17_s10, 128  ;;  %p605_p4 = scmp.lt.s32.totalorder %s17_s10, %s17_s10 }
   0xa   :  { %p601_p3 = scmp.ne.s32.totalorder %s17_s10, %s600_s18  ;;  %p606_p5 = scmp.lt.s32.totalorder %s600_s18, %s600_s18 }
   0xc   :  { %p607_p6 = por %p606_p5, %p605_p4 }
   0xe   :  { %p608_p7 = pnand %p607_p6, %p601_p3 }
  0x10   :  { %611 = shalt.err (!%p608_p7)
}
  0x11   :  { %19 = dma.hbm_to_vmem [thread:$0]  %s806_s0, 128, %s17_s10, [#allocation3]  }
  0x12   :  { %s612_s23 = scalar_lea.hbm %s807_s1, 16 }
  0x13   :  { %p613_p8 = scmp.ne.s32.totalorder %s807_s1, %s612_s23  ;;  %p616_p9 = scmp.lt.u32.totalorder %s612_s23, %s807_s1 }
  0x15   :  { %p618_p10 = pnand %p616_p9, %p613_p8 }
  0x17   :  { %621 = shalt.err (!%p618_p10)
}
  0x18   :  { %s651_s28 = smov [#allocation6]  }
  0x19   :  { %27 = dma.hbm_to_smem %s807_s1, 16, %s651_s28, [#allocation5]  }
  0x1a   :  { %644 = dma.done.wait [#allocation3], 128  }
  0x1b   :  { %645 = vsyncadd [#allocation3], 4294967168 }
  0x1c   :  { %646 = dma.done.wait [#allocation5], 16  }
  0x1d   :  { %647 = vsyncadd [#allocation5], 4294967280 }
  0x1e   :  { %34 = sfence }
  0x1f   :  { %s553_s0 = sld [smem:[#allocation6 + $0xa]]  ;;  %s552_s3 = sld [smem:[#allocation6 + $0x1]]  ;;  %v703_v0 = vld [vmem:[#allocation2] sm:$0xff]  ;;  %vm505_vm0 = vcmask 1040384   ;;  %vm514_vm1 = vcmask 1041408   ;;  %vm523_vm2 = vcmask 124928  }
  0x20   :  { %s554_s4 = sld [smem:[#allocation6 + $0x13]]  ;;  %s557_s6 = sld [smem:[#allocation6 + $0x14]] }
  0x21   :  { %s556_s5 = sld [smem:[#allocation6 + $0xb]]  ;;  %s555_s7 = sld [smem:[#allocation6 + $0x2]] }
  0x22   :  { %s559_s8 = sld [smem:[#allocation6 + $0xc]]  ;;  %s560_s1 = sld [smem:[#allocation6 + $0x15]] }
  0x23   :  { %s652_s9 = smov 127   ;;  %s558_s10 = sld [smem:[#allocation6 + $0x3]] }
  0x24   :  { %s562_s11 = sld [smem:[#allocation6 + $0xd]]  ;;  %s653_s12 = smov 126  }
  0x25   :  { %v62_v1 = vstv %s553_s0  ;;  %v53_v3 = vstv %s552_s3  ;;  %s563_s13 = sld [smem:[#allocation6 + $0x16]]  ;;  %s561_s14 = sld [smem:[#allocation6 + $0x4]] }
  0x26   :  { %v63_v2 = vmul.f32 %v62_v1, %v703_v0  ;;  %v71_v4 = vstv %s554_s4  ;;  %v54_v5 = vmul.f32 %v53_v3, %v703_v0  ;;  %v98_v9 = vstv %s557_s6  ;;  %s565_s15 = sld [smem:[#allocation6 + $0xe]]  ;;  %s566_s16 = sld [smem:[#allocation6 + $0x17]] }
  0x27   :  { %v89_v6 = vstv %s556_s5  ;;  %v72_v7 = vmul.f32 %v71_v4, %v703_v0  ;;  %v80_v10 = vstv %s555_s7  ;;  %v99_v11 = vmul.f32 %v98_v9, %v703_v0  ;;  %s654_s17 = smov 125   ;;  %s564_s18 = sld [smem:[#allocation6 + $0x5]] }
  0x28   :  { %65 = vrot.lane.b32.xlu0 %v63_v2, %s652_s9  ;;  %56 = vrot.lane.b32.xlu1 %v54_v5, %s652_s9  ;;  %v90_v8 = vmul.f32 %v89_v6, %v703_v0  ;;  %v81_v12 = vmul.f32 %v80_v10, %v703_v0  ;;  %v116_v13 = vstv %s559_s8  ;;  %v125_v14 = vstv %s560_s1  ;;  %s568_s19 = sld [smem:[#allocation6 + $0xf]]  ;;  %s655_s20 = smov 124  }
  0x29   :  { %v117_v15 = vmul.f32 %v116_v13, %v703_v0  ;;  %v126_v16 = vmul.f32 %v125_v14, %v703_v0  ;;  %v107_v17 = vstv %s558_s10  ;;  %s569_s21 = sld [smem:[#allocation6 + $0x18]]  ;;  %s567_s22 = sld [smem:[#allocation6 + $0x6]]  ;;  %v660_v13 = vmov 1966171168  }
  0x2a   :  { %v143_v18 = vstv %s562_s11  ;;  %v108_v19 = vmul.f32 %v107_v17, %v703_v0  ;;  %s571_s23 = sld [smem:[#allocation6 + $0x10]]  ;;  %s572_s24 = sld [smem:[#allocation6 + $0x19]]  ;;  %v270_v14 = vunpack.c.l.s4 %v660_v13 }
  0x2b   :  { %v144_v20 = vmul.f32 %v143_v18, %v703_v0  ;;  %v152_v21 = vstv %s563_s13  ;;  %v134_v22 = vstv %s561_s14  ;;  %s656_s25 = smov 123   ;;  %s570_s26 = sld [smem:[#allocation6 + $0x7]] }
  0x2c   :  { %74 = vrot.lane.b32.xlu0 %v72_v7, %s652_s9  ;;  %92 = vrot.lane.b32.xlu1 %v90_v8, %s653_s12  ;;  %v153_v23 = vmul.f32 %v152_v21, %v703_v0  ;;  %v135_v24 = vmul.f32 %v134_v22, %v703_v0  ;;  %v170_v25 = vstv %s565_s15  ;;  %v179_v26 = vstv %s566_s16  ;;  %s574_s27 = sld [smem:[#allocation6 + $0x11]]  ;;  %s657_s28 = smov 122  }
  0x2d   :  { %v171_v27 = vmul.f32 %v170_v25, %v703_v0  ;;  %v180_v28 = vmul.f32 %v179_v26, %v703_v0  ;;  %v161_v29 = vstv %s564_s18  ;;  %s575_s29 = sld [smem:[#allocation6 + $0x1a]]  ;;  %s573_s30 = sld [smem:[#allocation6 + $0x8]] }
  0x2e   :  { %v197_v30 = vstv %s568_s19  ;;  %v162_v31 = vmul.f32 %v161_v29, %v703_v0  ;;  %s658_s0 = smov 121   ;;  %s659_s3 = smov 120  }
  0x2f   :  { %v198_v32 = vmul.f32 %v197_v30, %v703_v0  ;;  %v206_v33 = vstv %s569_s21  ;;  %v188_v34 = vstv %s567_s22  ;;  %s550_s4 = sld [smem:[#allocation6 + $0x9]]  ;;  %s551_s5 = sld [smem:[#allocation6 + $0x12]] }
  0x30   :  { %101 = vrot.lane.b32.xlu0 %v99_v11, %s653_s12  ;;  %83 = vrot.lane.b32.xlu1 %v81_v12, %s653_s12  ;;  %v207_v35 = vmul.f32 %v206_v33, %v703_v0  ;;  %v189_v36 = vmul.f32 %v188_v34, %v703_v0  ;;  %v224_v37 = vstv %s571_s23  ;;  %v233_v38 = vstv %s572_s24  ;;  %s37_s6 = sld [smem:[#allocation6]]  ;;  %s661_s7 = smov [#allocation7]  }
  0x31   :  { %v225_v39 = vmul.f32 %v224_v37, %v703_v0  ;;  %v234_v40 = vmul.f32 %v233_v38, %v703_v0  ;;  %v215_v41 = vstv %s570_s26  ;;  %s537_s8 = sshll.u32 %s661_s7, 4  ;;  %s538_s8 = int_to_ptr.vmem [resolvable:$true] %s537_s8 }
  0x32   :  { %v251_v42 = vstv %s574_s27  ;;  %v216_v43 = vmul.f32 %v215_v41, %v703_v0  ;;  %s622_s1 = scalar_lea.vmem %s538_s8, 512  ;;  %p627_p12 = scmp.lt.s32.totalorder %s538_s8, %s538_s8 }
  0x33   :  { %v252_v44 = vmul.f32 %v251_v42, %v703_v0  ;;  %v260_v45 = vstv %s575_s29  ;;  %v242_v46 = vstv %s573_s30  ;;  %p623_p11 = scmp.ne.s32.totalorder %s538_s8, %s622_s1  ;;  %p628_p13 = scmp.lt.s32.totalorder %s622_s1, %s622_s1 }
  0x34   :  { %119 = vrot.lane.b32.xlu0 %v117_v15, %s654_s17  ;;  %128 = vrot.lane.b32.xlu1 %v126_v16, %s654_s17  ;;  %v261_v47 = vmul.f32 %v260_v45, %v703_v0  ;;  %v243_v48 = vmul.f32 %v242_v46, %v703_v0  ;;  %v272_v15 = vlaneseq }
  0x35   :  { %v43_v60 = vstv %s550_s4  ;;  %v48_v63 = vstv %s551_s5  ;;  %p629_p0 = por %p628_p13, %p627_p12 }
  0x36   :  { %v44_v62 = vmul.f32 %v43_v60, %v703_v0  ;;  %v49_v3 = vmul.f32 %v48_v63, %v703_v0  ;;  %v38_v6 = vstv %s37_s6 }
  0x37   :  { %v39_v10 = vmul.f32 %v38_v6, %v703_v0  ;;  %p630_p1 = pnand %p629_p0, %p623_p11 }
  0x38   :  { %110 = vrot.lane.b32.xlu0 %v108_v19, %s654_s17  ;;  %146 = vrot.lane.b32.xlu1 %v144_v20, %s655_s20 }
  0x3c   :  { %155 = vrot.lane.b32.xlu0 %v153_v23, %s655_s20  ;;  %137 = vrot.lane.b32.xlu1 %v135_v24, %s655_s20  ;;  %v271_v23 = vunpack.c.0.s8 %v270_v14  ;;  %v273_v24 = vshrl.u32 %v272_v15, 7 }
  0x40   :  { %173 = vrot.lane.b32.xlu0 %v171_v27, %s656_s25  ;;  %182 = vrot.lane.b32.xlu1 %v180_v28, %s656_s25 }
  0x44   :  { %164 = vrot.lane.b32.xlu0 %v162_v31, %s656_s25  ;;  %200 = vrot.lane.b32.xlu1 %v198_v32, %s657_s28  ;;  %v732_v32 = vsub.s32 %v271_v23, %v273_v24 }
  0x48   :  { %209 = vrot.lane.b32.xlu0 %v207_v35, %s657_s28  ;;  %191 = vrot.lane.b32.xlu1 %v189_v36, %s657_s28 }
  0x4c   :  { %227 = vrot.lane.b32.xlu0 %v225_v39, %s658_s0  ;;  %236 = vrot.lane.b32.xlu1 %v234_v40, %s658_s0 }
  0x50   :  { %218 = vrot.lane.b32.xlu0 %v216_v43, %s658_s0  ;;  %254 = vrot.lane.b32.xlu1 %v252_v44, %s659_s3 }
  0x54   :  { %263 = vrot.lane.b32.xlu0 %v261_v47, %s659_s3  ;;  %245 = vrot.lane.b32.xlu1 %v243_v48, %s659_s3 }
  0x9a   :  { %v66_v49 = vpop.permute.xlu0 %65  ;;  %v57_v50 = vpop.permute.xlu1 %56 }
  0x9b   :  { %v68_v4 = vadd.f32 %v66_v49, %v44_v62  ;;  %v59_v20 = vadd.f32 %v57_v50, %v39_v10 }
  0x9e   :  { %v75_v51 = vpop.permute.xlu0 %74  ;;  %v93_v52 = vpop.permute.xlu1 %92 }
  0x9f   :  { %v95_v8 = vadd.f32 %v93_v52, %v68_v4  ;;  %v77_v9 = vadd.f32 %v75_v51, %v49_v3 }
  0xa2   :  { %v102_v53 = vpop.permute.xlu0 %101  ;;  %v84_v54 = vpop.permute.xlu1 %83 }
  0xa3   :  { %v104_v16 = vadd.f32 %v102_v53, %v77_v9  ;;  %v86_v27 = vadd.f32 %v84_v54, %v59_v20  ;;  %v740_v54 = vsub.s32 0, %v273_v24 }
  0xa6   :  { %v120_v55 = vpop.permute.xlu0 %119  ;;  %v129_v56 = vpop.permute.xlu1 %128 }
  0xa7   :  { %v122_v11 = vadd.f32 %v120_v55, %v95_v8  ;;  %v131_v19 = vadd.f32 %v129_v56, %v104_v16 }
  0xaa   :  { %v111_v57 = vpop.permute.xlu0 %110  ;;  %v147_v58 = vpop.permute.xlu1 %146 }
  0xab   :  { %v149_v18 = vadd.f32 %v147_v58, %v122_v11  ;;  %v113_v0 = vadd.f32 %v111_v57, %v86_v27 }
  0xae   :  { %v156_v59 = vpop.permute.xlu0 %155  ;;  %v138_v61 = vpop.permute.xlu1 %137 }
  0xaf   :  { %v158_v25 = vadd.f32 %v156_v59, %v131_v19  ;;  %v140_v35 = vadd.f32 %v138_v61, %v113_v0 }
  0xb2   :  { %v174_v1 = vpop.permute.xlu0 %173  ;;  %v183_v2 = vpop.permute.xlu1 %182 }
  0xb3   :  { %v176_v21 = vadd.f32 %v174_v1, %v149_v18  ;;  %v185_v29 = vadd.f32 %v183_v2, %v158_v25 }
  0xb6   :  { %v165_v5 = vpop.permute.xlu0 %164  ;;  %v201_v7 = vpop.permute.xlu1 %200 }
  0xb7   :  { %v203_v28 = vadd.f32 %v201_v7, %v176_v21  ;;  %v167_v38 = vadd.f32 %v165_v5, %v140_v35 }
  0xba   :  { %v210_v12 = vpop.permute.xlu0 %209  ;;  %v192_v17 = vpop.permute.xlu1 %191 }
  0xbb   :  { %v212_v33 = vadd.f32 %v210_v12, %v185_v29  ;;  %v194_v43 = vadd.f32 %v192_v17, %v167_v38 }
  0xbe   :  { %v228_v22 = vpop.permute.xlu0 %227  ;;  %v237_v26 = vpop.permute.xlu1 %236 }
  0xbf   :  { %v230_v30 = vadd.f32 %v228_v22, %v203_v28  ;;  %v239_v37 = vadd.f32 %v237_v26, %v212_v33 }
  0xc2   :  { %v219_v31 = vpop.permute.xlu0 %218  ;;  %v255_v34 = vpop.permute.xlu1 %254 }
  0xc3   :  { %v257_v36 = vadd.f32 %v255_v34, %v230_v30  ;;  %v221_v50 = vadd.f32 %v219_v31, %v194_v43 }
  0xc5   :  { %v326_v39 = vcombine.high %v257_v36, %v257_v36  ;;  %v333_v40 = vrot.slane %v257_v36, %v732_v32 }
  0xc6   :  { %v264_v41 = vpop.permute.xlu0 %263  ;;  %v246_v49 = vpop.permute.xlu1 %245 }
  0xc7   :  { %v266_v42 = vadd.f32 %v264_v41, %v239_v37  ;;  %v340_v44 = vrot.slane %v326_v39, %v732_v32  ;;  %v341_v45 = vcombine.high %v333_v40, %v333_v40  ;;  %v349_v46 = vrot.slane %v333_v40, %v732_v32 }
  0xc8   :  { %v248_v59 = vadd.f32 %v246_v49, %v221_v50 }
  0xc9   :  { %v376_v47 = vcombine.high %v266_v42, %v266_v42  ;;  %v383_v48 = vrot.slane %v266_v42, %v732_v32  ;;  %v342_v51 = vcombine.high %v340_v44, %v340_v44  ;;  %v356_v52 = vrot.slane %v340_v44, %v732_v32 }
  0xca   :  { %v363_v53 = vrot.slane %v341_v45, %v732_v32  ;;  %v371_v58 = vcombine.high %v349_v46, %v349_v46  ;;  %v428_v3 = vrot.slane %v349_v46, %v740_v54  ;;  %v268_v9 = vcombine.high %v248_v59, %v248_v59 }
  0xcb   :  { %v390_v55 = vrot.slane %v376_v47, %v732_v32  ;;  %v391_v56 = vcombine.high %v383_v48, %v383_v48  ;;  %v370_v57 = vrot.slane %v342_v51, %v732_v32  ;;  %v399_v62 = vrot.slane %v383_v48, %v732_v32 }
  0xcc   :  { %v373_v60 = vcombine.high %v363_v53, %v363_v53  ;;  %v372_v1 = vcombine.high %v356_v52, %v356_v52  ;;  %v432_v6 = vrot.slane %v363_v53, %v740_v54  ;;  %v436_v7 = vrot.slane %v371_v58, %v740_v54 }
  0xcd   :  { %v392_v61 = vcombine.high %v390_v55, %v390_v55  ;;  %v406_v63 = vrot.slane %v390_v55, %v732_v32  ;;  %v374_v2 = vcombine.high %v370_v57, %v370_v57  ;;  %v413_v4 = vrot.slane %v391_v56, %v732_v32 }
  0xce   :  { %v444_v8 = vrot.slane %v356_v52, %v740_v54  ;;  %v440_v10 = vrot.slane %v373_v60, %v740_v54  ;;  %v448_v11 = vrot.slane %v370_v57, %v740_v54  ;;  %v421_v12 = vcombine.high %v399_v62, %v399_v62 }
  0xcf   :  { %v420_v5 = vrot.slane %v392_v61, %v732_v32  ;;  %v422_v13 = vcombine.high %v406_v63, %v406_v63  ;;  %v452_v14 = vrot.slane %v372_v1, %v740_v54  ;;  %v456_v15 = vrot.slane %v374_v2, %v740_v54 }
  0xd0   :  { %v275_v16 = vrot.slane %v248_v59, %v732_v32  ;;  %v282_v17 = vrot.slane %v268_v9, %v732_v32  ;;  %v423_v18 = vcombine.high %v413_v4, %v413_v4  ;;  %v468_v20 = vrot.slane %v399_v62, %v740_v54 }
  0xd1   :  { %v424_v19 = vcombine.high %v420_v5, %v420_v5  ;;  %v484_v21 = vrot.slane %v406_v63, %v740_v54  ;;  %v472_v26 = vrot.slane %v413_v4, %v740_v54  ;;  %v476_v27 = vrot.slane %v421_v12, %v740_v54 }
  0xd2   :  { %v283_v22 = vcombine.high %v275_v16, %v275_v16  ;;  %v284_v23 = vcombine.high %v282_v17, %v282_v17  ;;  %v291_v24 = vrot.slane %v275_v16, %v732_v32  ;;  %v298_v25 = vrot.slane %v282_v17, %v732_v32 }
  0xd3   :  { %v488_v28 = vrot.slane %v420_v5, %v740_v54  ;;  %v492_v29 = vrot.slane %v422_v13, %v740_v54  ;;  %v480_v34 = vrot.slane %v423_v18, %v740_v54  ;;  %v496_v35 = vrot.slane %v424_v19, %v740_v54 }
  0xd4   :  { %v305_v0 = vrot.slane %v283_v22, %v732_v32  ;;  %v312_v30 = vrot.slane %v284_v23, %v732_v32  ;;  %v313_v31 = vcombine.high %v291_v24, %v291_v24  ;;  %v314_v33 = vcombine.high %v298_v25, %v298_v25 }
  0xd5   :  { %v506_v36 = vsel %vm505_vm0, %v291_v24, %v428_v3  ;;  %v510_v37 = vsel %vm505_vm0, %v298_v25, %v444_v8 }
  0xd6   :  { %v315_v38 = vcombine.high %v305_v0, %v305_v0  ;;  %v316_v39 = vcombine.high %v312_v30, %v312_v30  ;;  %v507_v40 = vsel %vm505_vm0, %v305_v0, %v432_v6  ;;  %v508_v41 = vsel %vm505_vm0, %v313_v31, %v436_v7 }
  0xd7   :  { %v511_v32 = vsel %vm505_vm0, %v312_v30, %v448_v11  ;;  %v512_v42 = vsel %vm505_vm0, %v314_v33, %v452_v14  ;;  %v515_v43 = vsel %vm514_vm1, %v506_v36, %v468_v20  ;;  %v516_v44 = vsel %vm514_vm1, %v507_v40, %v472_v26 }
  0xd8   :  { %v509_v45 = vsel %vm505_vm0, %v315_v38, %v440_v10  ;;  %v513_v46 = vsel %vm505_vm0, %v316_v39, %v456_v15  ;;  %v517_v47 = vsel %vm514_vm1, %v508_v41, %v476_v27  ;;  %v519_v48 = vsel %vm514_vm1, %v510_v37, %v484_v21  ;;  %524 = vst.msk [vmem:[#allocation7] sm:$0x7] %vm523_vm2, %v515_v43 }
  0xd9   :  { %525 = vst.msk [vmem:[#allocation7 + $0x4] sm:$0x7] %vm523_vm2, %v516_v44  ;;  %v518_v49 = vsel %vm514_vm1, %v509_v45, %v480_v34  ;;  %v520_v50 = vsel %vm514_vm1, %v511_v32, %v488_v28  ;;  %v521_v51 = vsel %vm514_vm1, %v512_v42, %v492_v29  ;;  %v522_v52 = vsel %vm514_vm1, %v513_v46, %v496_v35 }
  0xda   :  { %526 = vst.msk [vmem:[#allocation7 + $0x8] sm:$0x7] %vm523_vm2, %v517_v47  ;;  %528 = vst.msk [vmem:[#allocation7 + $0x10] sm:$0x7] %vm523_vm2, %v519_v48 }
  0xdb   :  { %527 = vst.msk [vmem:[#allocation7 + $0xc] sm:$0x7] %vm523_vm2, %v518_v49  ;;  %529 = vst.msk [vmem:[#allocation7 + $0x14] sm:$0x7] %vm523_vm2, %v520_v50 }
  0xdc   :  { %530 = vst.msk [vmem:[#allocation7 + $0x18] sm:$0x7] %vm523_vm2, %v521_v51  ;;  %531 = vst.msk [vmem:[#allocation7 + $0x1c] sm:$0x7] %vm523_vm2, %v522_v52 }
  0xdd   :  { %633 = shalt.err (!%p630_p1)
}
  0xde   :  { %s634_s11 = scalar_lea.hbm %s808_s2, 512 }
  0xdf   :  { %p635_p2 = scmp.ne.s32.totalorder %s808_s2, %s634_s11  ;;  %p638_p3 = scmp.lt.u32.totalorder %s634_s11, %s808_s2 }
  0xe1   :  { %p640_p4 = pnand %p638_p3, %p635_p2 }
  0xe3   :  { %643 = shalt.err (!%p640_p4)
}
  0xe4   :  { %s662_s16 = smov 64   ;;  %s663_s17 = smov 4  }
  0xe5   :  { %543 = dma.vmem_to_hbm [thread:$0]  %s538_s8, 512, %s808_s2, [#allocation4], %s662_s16, %s662_s16, %s663_s17  }
  0xe6   :  { %648 = dma.done.wait [#allocation4], 512  }
  0xe7   :  { %649 = vsyncadd [#allocation4], 4294966784 }
  0xe8   :  { %547 = vsyncpa [#allocation3], 1 }
  0xe9   :  { %548 = vsyncpa [#allocation4], 1 }
  0xea   :  { %549 = vsyncpa [#allocation5], 1 }

</bundles_post_ra>
